<compile_context>
chip_gen: v7x
topology: tpu7x:2x2x1
jax: 0.10.0
libtpu: 0.0.40
codegen_flags: <defaults>
</compile_context>

<pallas_src>
import functools

import jax
import jax.numpy as jnp
from jax.experimental import pallas as pl
from jax.experimental.pallas import tpu as pltpu


# Tile targets sized for production mamba shapes (D~4096, L~2048):
# (1, 256, 2048) f32 = 2 MiB per x tile.
_TD_TARGET = 256
_TL_TARGET = 2048


def _pick_tile(dim, target, align):
    """Largest tile <= target that is a multiple of `align`, or the full dim."""
    if dim <= target:
        return dim                       # full extent -> always legal
    return max((target // align) * align, align)


def _tiles_for(x):
    _, D, L = x.shape
    sub_align = 16 if x.dtype == jnp.bfloat16 else 8
    TD = _pick_tile(D, _TD_TARGET, sub_align)
    TL = _pick_tile(L, _TL_TARGET, 128)
    return TD, TL


def _cost(x):
    n = x.size
    return pl.CostEstimate(flops=6 * n, transcendentals=0,
                           bytes_accessed=2 * n * x.dtype.itemsize)


# ---------------------------------------------------------------------------
# Kernels
# ---------------------------------------------------------------------------
def _q_act_kernel_per_channel(x_ref, inv_s_ref, s_ref, z_ref, o_ref, *, qmin, qmax):
    """x tile (1, TD, TL); per-channel inv_s/s/z tiles (1, TD, 1) in f32."""
    x = x_ref[...].astype(jnp.float32)
    inv_s = inv_s_ref[...]
    s = s_ref[...]
    z = z_ref[...]
    y = jnp.clip(x * inv_s + z, qmin, qmax)          # F.hardtanh
    o_ref[...] = (jnp.round(y - z) * s).astype(o_ref.dtype)


def _q_act_kernel_per_tensor(x_ref, p_ref, o_ref, *, qmin, qmax):
    """x tile (1, TD, TL); p_ref is a (3,) f32 SMEM array = [inv_s, s, z]."""
    inv_s = p_ref[0]
    s = p_ref[1]
    z = p_ref[2]
    x = x_ref[...].astype(jnp.float32)
    y = jnp.clip(x * inv_s + z, qmin, qmax)
    o_ref[...] = (jnp.round(y - z) * s).astype(o_ref.dtype)


# ---------------------------------------------------------------------------
# Wrappers
# ---------------------------------------------------------------------------
def q_act_forward_per_channel(x, inv_s, s, z, qmin, qmax):
    """x: (B, D, L); inv_s/s/z: (1, D, 1) f32."""
    B, D, L = x.shape
    TD, TL = _tiles_for(x)
    grid = (B, pl.cdiv(D, TD), pl.cdiv(L, TL))
    kernel = functools.partial(_q_act_kernel_per_channel,
                               qmin=float(qmin), qmax=float(qmax))
    x_spec = pl.BlockSpec((1, TD, TL), lambda b, d, l: (b, d, l))
    o_spec = pl.BlockSpec((1, TD, TL), lambda b, d, l: (b, d, l))
    ch_spec = pl.BlockSpec((1, TD, 1), lambda b, d, l: (0, d, 0))
    return pl.pallas_call(
        kernel,
        out_shape=jax.ShapeDtypeStruct((B, D, L), x.dtype),
        grid_spec=pltpu.PrefetchScalarGridSpec(
            num_scalar_prefetch=0,
            grid=grid,
            in_specs=[x_spec, ch_spec, ch_spec, ch_spec],
            out_specs=o_spec,
        ),
        compiler_params=pltpu.CompilerParams(
            dimension_semantics=("parallel", "parallel", "parallel")),
        cost_estimate=_cost(x),
    )(x, inv_s, s, z)


def q_act_forward_per_tensor(x, params, qmin, qmax):
    """x: (B, D, L); params: (3,) f32 = [inv_s, s, z] (kept in SMEM)."""
    B, D, L = x.shape
    TD, TL = _tiles_for(x)
    grid = (B, pl.cdiv(D, TD), pl.cdiv(L, TL))
    kernel = functools.partial(_q_act_kernel_per_tensor,
                               qmin=float(qmin), qmax=float(qmax))
    x_spec = pl.BlockSpec((1, TD, TL), lambda b, d, l: (b, d, l))
    o_spec = pl.BlockSpec((1, TD, TL), lambda b, d, l: (b, d, l))
    return pl.pallas_call(
        kernel,
        out_shape=jax.ShapeDtypeStruct((B, D, L), x.dtype),
        grid_spec=pltpu.PrefetchScalarGridSpec(
            num_scalar_prefetch=0,
            grid=grid,
            in_specs=[x_spec,
                      pl.BlockSpec(memory_space=pltpu.MemorySpace.SMEM)],
            out_specs=o_spec,
        ),
        compiler_params=pltpu.CompilerParams(
            dimension_semantics=("parallel", "parallel", "parallel")),
        cost_estimate=_cost(x),
    )(x, params)


# ---------------------------------------------------------------------------
# Q_Act module equivalent (init / calibration in plain JAX, hot path in Pallas)
# ---------------------------------------------------------------------------
class QAct:
    def __init__(self):
        self.n_lv = 0
        self.s = jnp.ones((1,), jnp.float32)   # Parameter(torch.ones(1))
        self.z = None
        self.inv_s = None
        self.per_token = False

    def initialize(self, n_lv, tensor, per_token=False):
        # tensor: (B, D, L) calibration activations
        self.n_lv = n_lv
        self.qmin = 0
        self.qmax = n_lv - 1
        self.per_token = per_token
        t = jnp.asarray(tensor, jnp.float32)
        if per_token:
            xp = jnp.transpose(t, (0, 2, 1))               # (B, L, D)
            xp = xp.reshape(-1, xp.shape[-1])              # (B*L, D)
            max_val = xp.max(axis=0, keepdims=True)        # (1, D)
            min_val = xp.min(axis=0, keepdims=True)        # (1, D)
            val = (max_val - min_val) / self.qmax
            val = jnp.maximum(val, 1e-8)                   # guard s == 0
            self.s = val[..., None]                        # (1, D, 1)
            self.z = -jnp.round(min_val[..., None] / self.s)
            self.inv_s = 1.0 / self.s
        else:
            max_val = t.max()
            min_val = t.min()
            val = jnp.maximum((max_val - min_val) / self.qmax, 1e-8)
            self.s = val.astype(jnp.float32)
            self.z = -jnp.round(min_val / self.s)
            self.inv_s = 1.0 / self.s

    def __call__(self, x):
        if self.n_lv == 0:
            return x
        if self.per_token:
            return q_act_forward_per_channel(
                x, self.inv_s, self.s, self.z, self.qmin, self.qmax)
        params = jnp.stack([self.inv_s, self.s, self.z]).astype(jnp.float32)
        return q_act_forward_per_tensor(x, params, self.qmin, self.qmax)


# ---------------------------------------------------------------------------
# Reference (same reciprocal formulation, f32 internal math, output dtype of x)
# ---------------------------------------------------------------------------
def _reference(x, inv_s, s, z, qmin, qmax):
    xf = x.astype(jnp.float32)
    y = jnp.clip(xf * inv_s + z, float(qmin), float(qmax))
    return (jnp.round(y - z) * s).astype(x.dtype)


if __name__ == "__main__":
    ok = True

    # --- 1) per-tensor quantization, f32, tiny shape ---
    B, D, L = 2, 32, 8
    x = jax.random.normal(jax.random.PRNGKey(0), (B, D, L), jnp.float32) * 3.0
    qa = QAct()
    qa.initialize(n_lv=256, tensor=x, per_token=False)
    y = jax.block_until_ready(qa(x))
    ref = _reference(x, qa.inv_s, qa.s, qa.z, qa.qmin, qa.qmax)
    ok &= bool(jnp.allclose(y, ref, atol=1e-5, rtol=1e-5))

    # --- 2) per-token (per-channel over D) quantization, f32 ---
    qa2 = QAct()
    qa2.initialize(n_lv=16, tensor=x, per_token=True)
    y2 = jax.block_until_ready(qa2(x))
    ref2 = _reference(x, qa2.inv_s, qa2.s, qa2.z, qa2.qmin, qa2.qmax)
    ok &= bool(jnp.allclose(y2, ref2, atol=1e-5, rtol=1e-5))

    # --- 3) per-token, f32, shape that exercises D tiling + remainder block ---
    x3 = jax.random.normal(jax.random.PRNGKey(1), (1, 320, 136), jnp.float32) * 2.0
    qa3 = QAct()
    qa3.initialize(n_lv=256, tensor=x3, per_token=True)
    y3 = jax.block_until_ready(qa3(x3))
    ref3 = _reference(x3, qa3.inv_s, qa3.s, qa3.z, qa3.qmin, qa3.qmax)
    ok &= bool(jnp.allclose(y3, ref3, atol=1e-5, rtol=1e-5))

    # --- 4) per-tensor, bf16 I/O (f32 internal math) ---
    xb = (jax.random.normal(jax.random.PRNGKey(2), (2, 64, 256), jnp.float32)
          * 3.0).astype(jnp.bfloat16)
    qa4 = QAct()
    qa4.initialize(n_lv=256, tensor=xb, per_token=False)
    y4 = jax.block_until_ready(qa4(xb))
    ref4 = _reference(xb, qa4.inv_s, qa4.s, qa4.z, qa4.qmin, qa4.qmax)
    ok &= bool(jnp.allclose(y4.astype(jnp.float32), ref4.astype(jnp.float32),
                            atol=0.1))

    # --- 5) n_lv == 0 identity path ---
    qa5 = QAct()
    y5 = jax.block_until_ready(qa5(x))
    ok &= bool(jnp.array_equal(y5, x))

    # TODO(synk): RoundQuant's straight-through-estimator backward is training-only
    # and not implemented here (forward pass only, as specified).

    print("KERNEL_OK" if ok else "KERNEL_MISMATCH")
</pallas_src>

<mosaic_0001>
module attributes {stable_mosaic.version = 11 : i64} {
  func.func @_q_act_kernel_per_tensor(%arg0: i32, %arg1: i32, %arg2: i32, %arg3: memref<1x32x8xf32, #tpu.memory_space<vmem>>, %arg4: memref<3xf32, #tpu.memory_space<smem>>, %arg5: memref<1x32x8xf32, #tpu.memory_space<vmem>>) attributes {dimension_semantics = [#tpu.dimension_semantics<parallel>, #tpu.dimension_semantics<parallel>, #tpu.dimension_semantics<parallel>], iteration_bounds = array<i64: 2, 1, 1>, scalar_prefetch = 0 : i64, scratch_operands = 0 : i64, tpu.core_type = #tpu.core_type<tc>, window_params = [{transform_indices = @transform_0, window_bounds = array<i64: 1, 32, 8>}, {transform_indices = @transform_1, window_bounds = array<i64: 3>}, {transform_indices = @transform_2, window_bounds = array<i64: 1, 32, 8>}]} {
    %c0 = arith.constant 0 : index
    %0 = memref.load %arg4[%c0] : memref<3xf32, #tpu.memory_space<smem>>
    %c1 = arith.constant 1 : index
    %1 = memref.load %arg4[%c1] : memref<3xf32, #tpu.memory_space<smem>>
    %c2 = arith.constant 2 : index
    %2 = memref.load %arg4[%c2] : memref<3xf32, #tpu.memory_space<smem>>
    %c0_0 = arith.constant 0 : index
    %c0_1 = arith.constant 0 : index
    %c0_2 = arith.constant 0 : index
    %3 = vector.load %arg3[%c0_0, %c0_1, %c0_2] : memref<1x32x8xf32, #tpu.memory_space<vmem>>, vector<1x32x8xf32>
    %4 = vector.broadcast %0 : f32 to vector<1x32x8xf32>
    %5 = arith.mulf %3, %4 : vector<1x32x8xf32>
    %6 = vector.broadcast %2 : f32 to vector<1x32x8xf32>
    %7 = arith.addf %5, %6 : vector<1x32x8xf32>
    %cst = arith.constant 0.000000e+00 : f32
    %cst_3 = arith.constant 2.550000e+02 : f32
    %8 = vector.broadcast %cst : f32 to vector<1x32x8xf32>
    %9 = arith.maximumf %8, %7 : vector<1x32x8xf32>
    %10 = vector.broadcast %cst_3 : f32 to vector<1x32x8xf32>
    %11 = arith.minimumf %10, %9 : vector<1x32x8xf32>
    %12 = vector.broadcast %2 : f32 to vector<1x32x8xf32>
    %13 = arith.subf %11, %12 : vector<1x32x8xf32>
    %14 = math.roundeven %13 : vector<1x32x8xf32>
    %15 = vector.broadcast %1 : f32 to vector<1x32x8xf32>
    %16 = arith.mulf %14, %15 : vector<1x32x8xf32>
    %c0_4 = arith.constant 0 : index
    %c0_5 = arith.constant 0 : index
    %c0_6 = arith.constant 0 : index
    %17 = vector.load %arg5[%c0_4, %c0_5, %c0_6] : memref<1x32x8xf32, #tpu.memory_space<vmem>>, vector<1x32x8xf32>
    tpu.vector_store %arg5[%c0_4, %c0_5, %c0_6], %16 {strides = array<i32>} : memref<1x32x8xf32, #tpu.memory_space<vmem>>, vector<1x32x8xf32>,
    return
  }
  func.func @transform_0(%arg0: i32, %arg1: i32, %arg2: i32) -> (i32, i32, i32) {
    %c0_i32 = arith.constant 0 : i32
    return %arg0, %arg1, %arg2 : i32, i32, i32
  }
  func.func @transform_1(%arg0: i32, %arg1: i32, %arg2: i32) -> i32 {
    %c0_i32 = arith.constant 0 : i32
    %c0_i32_0 = arith.constant 0 : i32
    return %c0_i32 : i32
  }
  func.func @transform_2(%arg0: i32, %arg1: i32, %arg2: i32) -> (i32, i32, i32) {
    %c0_i32 = arith.constant 0 : i32
    return %arg0, %arg1, %arg2 : i32, i32, i32
  }
}

</mosaic_0001>

<bundles_post_ra>
// kernel: tpu_custom_call.1
= control target key start
LH: loop header
LB: loop body
LE: loop exit
PB: predicated region body
PF: predicated region fallthrough
CT: control target
= control target key end

     0   :  { %7 = vsyncpa [#allocation3], 0  ;;  %s496_s9 = smov 0   ;;  %s498_s10 = smov 0   ;;  %s562_s0 = inlined_call_operand.vmem [shape: f32[2,32,8], index: 0, kind: input, shape index: {}]   ;;  %s563_s1 = inlined_call_operand.vmem [shape: f32[3], index: 1, kind: input, shape index: {}]   ;;  %s564_s2 = inlined_call_operand.vmem [shape: f32[2,32,8], index: 2, kind: output, shape index: {}]  }
   0x1   :  { %s500_s11 = smov 0  }
   0x2 LB: > { %s381_s12 = sadd.s32 4294967295, %s478_s11   ;;  %s32_s13 = sadd.s32 1, %s474_s10  ;;  %s478_s11 = sphi %s500_s11, %s13_s11   ;;  %s474_s10 = sphi %s498_s10, %s568_s10   ;;  %s470_s9 = sphi %s496_s9, %s567_s9  }
   0x3   : > { %p34_p0 = scmp.ge.s32.totalorder %s32_s13, 2  ;;  %p383_p1 = scmp.ge.s32.totalorder %s478_s11, 1 }
   0x4   : > { %p118_p2 = scmp.lt.s32.totalorder %s478_s11, 3  ;;  %p521_p4 = scmp.eq.s32.totalorder %s381_s12, 0 }
   0x5   : > { %s570_s13 = smov (%p34_p0, %s32_s13), 0  ;;  %s131_s18 = sshll.u32 %s563_s1, 4  ;;  %s132_s18 = int_to_ptr.vmem [resolvable:$true] %s131_s18 }
   0x6   : > { %p517_p3 = pnand %p383_p1, %p118_p2  ;;  %s437_s19 = scalar_lea.vmem %s132_s18, 16 }
   0x7   : > { %p438_p7 = scmp.ne.s32.totalorder %s132_s18, %s437_s19  ;;  %p445_p11 = scmp.lt.s32.totalorder %s132_s18, %s132_s18 }
   0x8   : > { %p406_p5 = pneg %p517_p3  ;;  %p446_p12 = scmp.lt.s32.totalorder %s437_s19, %s437_s19 }
   0xa   : > { %p407_p6 = pnand %p521_p4, %p406_p5  ;;  %p447_p13 = por %p446_p12, %p445_p11 }
   0xc   : > { %p439_p8 = pneg %p407_p6 }
   0xe   : > { %p440_p9 = pnand %p439_p8, %p438_p7 }
  0x10   : > { %p441_p10 = pneg %p440_p9 }
  0x12   : > { %p448_p0 = pnand %p447_p13, %p441_p10 }
  0x14   : > { %451 = shalt.err (!%p448_p0)
}
  0x15   : > { %s480_s20 = smov [#allocation2]   ;;  %160 = sbr.rel (%p517_p3) target bundleno = 54 (0x36), region = 28 }
  0x16   : > { %409 = dma.vmem_to_smem (!%p407_p6), %s132_s18, 16, %s480_s20, [#allocation3]  }
  0x1c   : > { %465 = dma.done.wait (%p521_p4), [#allocation3], 16  }
  0x1d   : > { %467 = vsyncadd (%p521_p4), [#allocation3], 4294967280 }
  0x1e   : > { %166 = sfence }
  0x1f   : > { %p198_p1 = scmp.lt.s32.totalorder %s470_s9, 1  ;;  %s223_s21 = sld [smem:[#allocation2]]  ;;  %vm261_vm0 = vcmask 64512  }
  0x20   : > { %s393_s22 = sld [smem:[#allocation2 + $0x2]]  ;;  %s392_s27 = sld [smem:[#allocation2 + $0x1]] }
  0x21   : > { %s572_s9 = smov (!%p198_p1, %s470_s9), 1 }
  0x22   : > { %s396_s23 = sshll.u32 %s572_s9, 5 }
  0x23   : > { %s208_s26 = scalar_lea.vmem %s562_s0, %s396_s23  ;;  %s221_s30 = scalar_lea.vmem %s564_s2, %s396_s23 }
  0x24   : > { %v226_v0 = vld [vmem:[%s208_s26] sm:$0xff]  ;;  %v227_v1 = vld [vmem:[%s208_s26 + $0x8] sm:$0xff]  ;;  %v228_v2 = vld [vmem:[%s208_s26 + $0x10] sm:$0xff] }
  0x25   : > { %v230_v3 = vstv %s223_s21  ;;  %v229_v4 = vld [vmem:[%s208_s26 + $0x18] sm:$0xff] }
  0x26   : > { %v231_v5 = vmul.f32 %v230_v3, %v226_v0  ;;  %v232_v6 = vmul.f32 %v230_v3, %v227_v1  ;;  %v233_v7 = vmul.f32 %v230_v3, %v228_v2  ;;  %v235_v8 = vstv %s393_s22 }
  0x27   : > { %v234_v9 = vmul.f32 %v230_v3, %v229_v4  ;;  %v256_v25 = vstv %s392_s27 }
  0x28   : > { %v236_v10 = vadd.f32 %v235_v8, %v231_v5  ;;  %v237_v11 = vadd.f32 %v235_v8, %v232_v6  ;;  %v238_v12 = vadd.f32 %v235_v8, %v233_v7 }
  0x29   : > { %v239_v13 = vadd.f32 %v235_v8, %v234_v9 }
  0x2a   : > { %v240_v14 = vmax.f32 %v236_v10, 0.0  ;;  %v241_v15 = vmax.f32 %v237_v11, 0.0  ;;  %v242_v16 = vmax.f32 %v238_v12, 0.0 }
  0x2b   : > { %v243_v17 = vmax.f32 %v239_v13, 0.0 }
  0x2c   : > { %v244_v18 = vmin.f32 %v240_v14, 255.0  ;;  %v245_v19 = vmin.f32 %v241_v15, 255.0  ;;  %v246_v20 = vmin.f32 %v242_v16, 255.0 }
  0x2d   : > { %v247_v21 = vmin.f32 %v243_v17, 255.0 }
  0x2e   : > { %v248_v22 = vsub.f32 %v244_v18, %v235_v8  ;;  %v249_v23 = vsub.f32 %v245_v19, %v235_v8  ;;  %v250_v24 = vsub.f32 %v246_v20, %v235_v8 }
  0x2f   : > { %v251_v26 = vsub.f32 %v247_v21, %v235_v8 }
  0x30   : > { %v398_v27 = vround.rtne.f32 %v248_v22  ;;  %v399_v28 = vround.rtne.f32 %v249_v23  ;;  %v400_v29 = vround.rtne.f32 %v250_v24 }
  0x31   : > { %v401_v30 = vround.rtne.f32 %v251_v26 }
  0x32   : > { %v257_v31 = vmul.f32 %v398_v27, %v256_v25  ;;  %v258_v32 = vmul.f32 %v399_v28, %v256_v25  ;;  %v259_v33 = vmul.f32 %v400_v29, %v256_v25 }
  0x33   : > { %v260_v34 = vmul.f32 %v401_v30, %v256_v25 }
  0x34   : > { %262 = vst.msk [vmem:[%s221_s30] sm:$0xff] %vm261_vm0, %v257_v31  ;;  %263 = vst.msk [vmem:[%s221_s30 + $0x8] sm:$0xff] %vm261_vm0, %v258_v32 }
  0x35   : > { %264 = vst.msk [vmem:[%s221_s30 + $0x10] sm:$0xff] %vm261_vm0, %v259_v33  ;;  %265 = vst.msk [vmem:[%s221_s30 + $0x18] sm:$0xff] %vm261_vm0, %v260_v34 }
  0x36 PF: > { %s13_s11 = sadd.s32 1, %s478_s11   ;;  %s567_s9 = smov %s474_s10 }
  0x37   : > { %p10_p2 = scmp.ge.s32.totalorder %s13_s11, 4   ;;  %s568_s10 = smov %s570_s13 }
  0x39   :  { %12 = sbr.rel (!%p10_p2) target bundleno = 2 (0x2), region = 63 }
  0x40   :  { %302 = vsyncpa [#allocation3], 1 }
  0x41   :  { %304 = vsyncpa [#allocation3 + $0x1], 1 }

</bundles_post_ra>
